<compile_context>
chip_gen: v6e
topology: v6e:2x2x1
jax: 0.10.0
libtpu: 0.0.40
codegen_flags: <defaults>
</compile_context>

<pallas_src>
import functools
import math

import jax
import jax.numpy as jnp
from jax.experimental import pallas as pl
from jax.experimental.pallas import tpu as pltpu

_SQRT_2 = 1.4142135623730951


# --------------------------------------------------------------------------
# Activation math (shared by the kernel body and the pure-JAX references).
# Built only from primitives with guaranteed Mosaic lowerings
# (exp / log / abs / where / min / max / arithmetic).
# --------------------------------------------------------------------------
def _erf_approx(x):
    # Abramowitz & Stegun 7.1.26, |abs error| <= 1.5e-7 (i.e. f32 precision).
    ax = jnp.abs(x)
    t = 1.0 / (1.0 + 0.3275911 * ax)
    poly = ((((1.061405429 * t - 1.453152027) * t + 1.421413741) * t
             - 0.284496736) * t + 0.254829592) * t
    y = 1.0 - poly * jnp.exp(-ax * ax)
    return jnp.where(x >= 0.0, y, -y)


def _relu(x):
    return jnp.maximum(x, 0.0)


def _elu(x):
    # PyTorch ELU(alpha=1): x if x > 0 else exp(x) - 1 (clamp before exp so the
    # unselected branch never overflows).
    return jnp.where(x > 0.0, x, jnp.exp(jnp.minimum(x, 0.0)) - 1.0)


def _gelu(x):
    # PyTorch nn.GELU default (exact, erf-based).
    return 0.5 * x * (1.0 + _erf_approx(x / _SQRT_2))


def _gelu_enformer(x):
    # Enformer GELU: x * sigmoid(1.702 * x)
    return x * (1.0 / (1.0 + jnp.exp(-1.702 * x)))


def _softplus(x):
    # PyTorch Softplus(beta=1, threshold=20).  log1p is built with Kahan's
    # trick from guaranteed-lowering primitives, preserving relative accuracy
    # for very negative x (perf-review correctness note).
    u = jnp.exp(jnp.minimum(x, 20.0))
    w = 1.0 + u
    log1p_u = jnp.where(w == 1.0, u, jnp.log(w) * (u / (w - 1.0)))
    return jnp.where(x > 20.0, x, log1p_u)


def _exp(x):
    return jnp.exp(x)


# name -> (fn, flops/elem, transcendentals/elem) for pl.CostEstimate.
_ACT_INFO = {
    "relu": (_relu, 1, 0),
    "elu": (_elu, 4, 1),
    "gelu": (_gelu, 20, 1),
    "gelu_enformer": (_gelu_enformer, 6, 2),
    "softplus": (_softplus, 10, 2),
    "exp": (_exp, 1, 1),
}


# --------------------------------------------------------------------------
# Pallas kernel: elementwise activation on a lane-dense (rows, LW) tile.
# --------------------------------------------------------------------------
def _act_kernel(x_ref, o_ref, *, act):
    x = x_ref[...].astype(jnp.float32)   # f32 compute (v5e-safe; DMA-bound anyway)
    o_ref[...] = act(x).astype(o_ref.dtype)


def _per_generation_config():
    """(target input bytes per block, vmem_limit_bytes), sized per chip."""
    try:
        vmem_cap = int(pltpu.get_tpu_info().vmem_capacity_bytes)
    except Exception:
        vmem_cap = 0
    if vmem_cap >= 96 * 1024 * 1024:
        # v5e / v6e: 128 MiB physical VMEM per TensorCore.
        return 8 * 1024 * 1024, 96 * 1024 * 1024
    # v7x (64 MiB per TensorCore) or unknown: stay conservative.
    return 4 * 1024 * 1024, 48 * 1024 * 1024


def _dimension_semantics():
    # v7x has two TensorCores per chip; only core-parallel semantics guarantee
    # the grid is sharded across both ("parallel" barely changes codegen).
    try:
        kind = jax.devices()[0].device_kind.lower()
    except Exception:
        kind = ""
    if ("v7" in kind or "7x" in kind) and hasattr(pltpu, "CORE_PARALLEL"):
        return (pltpu.CORE_PARALLEL,)
    return ("parallel",)


def _choose_tile_rows(n_rows, lane_width, itemsize, target_bytes):
    """Largest multiple-of-8 row tile near ~target_bytes of input per block."""
    rows = max(8, (target_bytes // (lane_width * itemsize)) // 8 * 8)
    if n_rows <= rows:
        return int(n_rows)   # single full-extent block (allowed even if not %8)
    return int(rows)         # partial trailing block handled by Pallas masking


def _apply_elementwise_2d(x2d, act, flops_pe, trans_pe):
    R, LW = x2d.shape
    target_bytes, vmem_limit = _per_generation_config()
    tile_rows = _choose_tile_rows(R, LW, x2d.dtype.itemsize, target_bytes)
    grid = (pl.cdiv(R, tile_rows),)
    n = R * LW
    cost = pl.CostEstimate(
        flops=int(flops_pe) * n,
        transcendentals=int(trans_pe) * n,
        bytes_accessed=2 * n * x2d.dtype.itemsize,
    )
    return pl.pallas_call(
        functools.partial(_act_kernel, act=act),
        out_shape=jax.ShapeDtypeStruct((R, LW), x2d.dtype),
        grid_spec=pltpu.PrefetchScalarGridSpec(
            num_scalar_prefetch=0,
            grid=grid,
            in_specs=[pl.BlockSpec((tile_rows, LW), lambda i: (i, 0))],
            out_specs=pl.BlockSpec((tile_rows, LW), lambda i: (i, 0)),
        ),
        compiler_params=pltpu.CompilerParams(
            dimension_semantics=_dimension_semantics(),
            vmem_limit_bytes=vmem_limit,
        ),
        cost_estimate=cost,
    )(x2d)


def _apply_activation(x, name):
    """Lane-dense 2-D view of the 128-aligned prefix through the kernel; the
    <=127-element ragged tail (if any) is computed with plain jnp."""
    act, flops_pe, trans_pe = _ACT_INFO[name]
    shape = x.shape
    total = int(math.prod(shape)) if shape else 1
    if total == 0:
        return x
    flat = x.reshape(-1)

    aligned = (total // 128) * 128
    if aligned == 0:
        # Fewer than 128 elements: not worth a kernel launch.
        return act(flat.astype(jnp.float32)).astype(x.dtype).reshape(shape)

    lane_width = 128
    for cand in (1024, 512, 256):
        if aligned % cand == 0:
            lane_width = cand
            break

    main = flat if aligned == total else flat[:aligned]
    x2d = main.reshape(aligned // lane_width, lane_width)
    y_main = _apply_elementwise_2d(x2d, act, flops_pe, trans_pe).reshape(-1)

    if aligned == total:
        return y_main.reshape(shape)

    # TODO(synk): the concatenate still copies the output once; a masked
    # partial last block inside the kernel would remove it, but ragged element
    # counts are not expected for (N, C, L) Enformer activations.
    tail = act(flat[aligned:].astype(jnp.float32)).astype(x.dtype)
    return jnp.concatenate([y_main, tail]).reshape(shape)


# --------------------------------------------------------------------------
# Activation module (JAX/Pallas mirror of the PyTorch module, forward only)
# --------------------------------------------------------------------------
class Activation:
    def __init__(self, func):
        if func is not None and func not in _ACT_INFO:
            raise NotImplementedError(func)
        self.func = func

    def __call__(self, x):
        # x: (N, C, L) — any shape works; the op is elementwise.
        if self.func is None:
            return x  # nn.Identity
        return _apply_activation(x, self.func)


# --------------------------------------------------------------------------
# Validation
# --------------------------------------------------------------------------
if __name__ == "__main__":
    key = jax.random.PRNGKey(0)
    N, C, L = 2, 32, 16
    x = 3.0 * jax.random.normal(key, (N, C, L), jnp.float32)

    # Pallas vs. the same math evaluated as plain JAX.
    for name, (ref_fn, _, _) in _ACT_INFO.items():
        y = jax.block_until_ready(Activation(name)(x))
        y_ref = ref_fn(x.astype(jnp.float32)).astype(x.dtype)
        assert y.shape == x.shape, name
        assert jnp.allclose(y, y_ref, atol=1e-5, rtol=1e-5), name

    # Cross-checks against jax.nn reference implementations.
    assert jnp.allclose(Activation("relu")(x), jax.nn.relu(x), atol=1e-6)
    assert jnp.allclose(Activation("elu")(x), jax.nn.elu(x), atol=1e-5, rtol=1e-5)
    assert jnp.allclose(Activation("gelu")(x), jax.nn.gelu(x, approximate=False),
                        atol=1e-5, rtol=1e-5)
    assert jnp.allclose(Activation("softplus")(x), jax.nn.softplus(x),
                        atol=1e-5, rtol=1e-5)

    # Identity.
    assert jnp.array_equal(Activation(None)(x), x)

    # Multi-block grid with a partial (masked) trailing block.
    x_big = jax.random.normal(jax.random.PRNGKey(1), (3, 80, 16384), jnp.float32)
    y_big = jax.block_until_ready(Activation("gelu_enformer")(x_big))
    assert jnp.allclose(y_big, _gelu_enformer(x_big), atol=1e-5, rtol=1e-5)

    # Ragged element count (aligned prefix through the kernel + jnp tail).
    x_odd = jax.random.normal(jax.random.PRNGKey(2), (3, 7, 13), jnp.float32)
    y_odd = jax.block_until_ready(Activation("softplus")(x_odd))
    assert y_odd.shape == x_odd.shape
    assert jnp.allclose(y_odd, jax.nn.softplus(x_odd), atol=1e-5, rtol=1e-5)

    # bf16 I/O (f32 compute inside the kernel).
    x_bf16 = x.astype(jnp.bfloat16)
    y_bf16 = jax.block_until_ready(Activation("gelu")(x_bf16))
    y_bf16_ref = jax.nn.gelu(x_bf16.astype(jnp.float32), approximate=False)
    assert y_bf16.dtype == jnp.bfloat16
    assert jnp.allclose(y_bf16.astype(jnp.float32), y_bf16_ref, atol=3e-2, rtol=3e-2)

    print("KERNEL_OK")
</pallas_src>

<mosaic_0001>
module attributes {stable_mosaic.version = 11 : i64} {
  func.func @_act_kernel(%arg0: i32, %arg1: memref<1x1024xf32, #tpu.memory_space<vmem>>, %arg2: memref<1x1024xf32, #tpu.memory_space<vmem>>) attributes {dimension_semantics = [#tpu.dimension_semantics<parallel>], iteration_bounds = array<i64: 1>, scalar_prefetch = 0 : i64, scratch_operands = 0 : i64, tpu.core_type = #tpu.core_type<tc>, window_params = [{transform_indices = @transform_0, window_bounds = array<i64: 1, 1024>}, {transform_indices = @transform_1, window_bounds = array<i64: 1, 1024>}]} {
    %c0 = arith.constant 0 : index
    %c0_0 = arith.constant 0 : index
    %0 = vector.load %arg1[%c0, %c0_0] : memref<1x1024xf32, #tpu.memory_space<vmem>>, vector<1x1024xf32>
    %cst = arith.constant 0.000000e+00 : f32
    %1 = vector.broadcast %cst : f32 to vector<1x1024xf32>
    %2 = arith.maximumf %0, %1 : vector<1x1024xf32>
    %c0_1 = arith.constant 0 : index
    %c0_2 = arith.constant 0 : index
    %3 = vector.load %arg2[%c0_1, %c0_2] : memref<1x1024xf32, #tpu.memory_space<vmem>>, vector<1x1024xf32>
    tpu.vector_store %arg2[%c0_1, %c0_2], %2 {strides = array<i32>} : memref<1x1024xf32, #tpu.memory_space<vmem>>, vector<1x1024xf32>,
    return
  }
  func.func @transform_0(%arg0: i32) -> (i32, i32) {
    %c0_i32 = arith.constant 0 : i32
    %c0_i32_0 = arith.constant 0 : i32
    return %arg0, %c0_i32 : i32, i32
  }
  func.func @transform_1(%arg0: i32) -> (i32, i32) {
    %c0_i32 = arith.constant 0 : i32
    %c0_i32_0 = arith.constant 0 : i32
    return %arg0, %c0_i32 : i32, i32
  }
}

</mosaic_0001>

<bundles_post_ra>
// kernel: tpu_custom_call.1
= control target key start
LH: loop header
LB: loop body
LE: loop exit
PB: predicated region body
PF: predicated region fallthrough
CT: control target
= control target key end

     0   :  { %6 = vsyncpa [#allocation3], 0  ;;  %s103_s0 = inlined_call_operand.hbm [shape: f32[1,1024], index: 0, kind: input, shape index: {}]   ;;  %s104_s1 = inlined_call_operand.hbm [shape: f32[1,1024], index: 1, kind: output, shape index: {}]  }
   0x1   :  { %7 = vsyncpa [#allocation4], 0  ;;  %s85_s6 = smov [#allocation2]  }
   0x2   :  { %s14_s7 = sshll.u32 %s85_s6, 4  ;;  %s15_s7 = int_to_ptr.vmem [resolvable:$true] %s14_s7 }
   0x3   :  { %s49_s8 = scalar_lea.vmem %s15_s7, 128  ;;  %p54_p1 = scmp.lt.s32.totalorder %s15_s7, %s15_s7 }
   0x4   :  { %p50_p0 = scmp.ne.s32.totalorder %s15_s7, %s49_s8  ;;  %p55_p2 = scmp.lt.s32.totalorder %s49_s8, %s49_s8 }
   0x6   :  { %p56_p3 = por %p55_p2, %p54_p1 }
   0x8   :  { %p57_p4 = pnand %p56_p3, %p50_p0 }
   0xa   :  { %60 = shalt.err (!%p57_p4)
}
   0xb   :  { %17 = dma.hbm_to_vmem [thread:$0]  %s103_s0, 128, %s15_s7, [#allocation3]  }
   0xc   :  { %81 = dma.done.wait [#allocation3], 128  }
   0xd   :  { %82 = vsyncadd [#allocation3], 4294967168  ;;  %s86_s11 = smov [#allocation5]   ;;  %v21_v0 = vld [vmem:[#allocation2] sm:$0xff] }
   0xe   :  { %s30_s12 = sshll.u32 %s86_s11, 4  ;;  %v22_v1 = vmax.f32 %v21_v0, 0.0  ;;  %s31_s12 = int_to_ptr.vmem [resolvable:$true] %s30_s12 }
   0xf   :  { %s61_s13 = scalar_lea.vmem %s31_s12, 128  ;;  %p66_p6 = scmp.lt.s32.totalorder %s31_s12, %s31_s12 }
  0x10   :  { %23 = vst [vmem:[#allocation5] sm:$0xff] %v22_v1  ;;  %p62_p5 = scmp.ne.s32.totalorder %s31_s12, %s61_s13  ;;  %p67_p7 = scmp.lt.s32.totalorder %s61_s13, %s61_s13 }
  0x12   :  { %p68_p8 = por %p67_p7, %p66_p6 }
  0x14   :  { %p69_p9 = pnand %p68_p8, %p62_p5 }
  0x16   :  { %72 = shalt.err (!%p69_p9)
}
  0x17   :  { %33 = dma.vmem_to_hbm [thread:$0]  %s31_s12, 128, %s104_s1, [#allocation4]  }
  0x18   :  { %83 = dma.done.wait [#allocation4], 128  }
  0x19   :  { %84 = vsyncadd [#allocation4], 4294967168 }
  0x1a   :  { %37 = vsyncpa [#allocation3], 1 }
  0x1b   :  { %38 = vsyncpa [#allocation4], 1 }

</bundles_post_ra>
